<compile_context>
chip_gen: v7x
topology: tpu7x:2x2x1
jax: 0.10.0
libtpu: 0.0.40
codegen_flags: <defaults>
</compile_context>

<pallas_src>
import functools

import jax
import jax.numpy as jnp
from jax import lax
from jax.experimental import pallas as pl
from jax.experimental.pallas import tpu as pltpu


def _round_up(v, m):
    return ((v + m - 1) // m) * m


def _row_tile(n):
    """Row-tile size: multiple of 8 sublanes, or the full dimension."""
    if n % 256 == 0:
        return 256
    if n % 128 == 0:
        return 128
    return n


def xw0_kernel(x_ref, w0_ref, xw0_ref):
    """xw0_tile = X_tile @ W0 (bf16 MXU inputs, f32 accumulation)."""
    xw0 = jnp.dot(x_ref[...], w0_ref[...], preferred_element_type=jnp.float32)
    xw0_ref[...] = xw0.astype(xw0_ref.dtype)


def layer0_kernel(a_ref, xw0_ref, w1_ref, g_ref):
    """g_tile = relu(A_tile @ (X @ W0)) @ W1  (W1 projection fused here)."""
    h0 = jnp.dot(a_ref[...], xw0_ref[...], preferred_element_type=jnp.float32)
    h0 = jnp.maximum(h0, 0.0)
    g = jnp.dot(h0.astype(jnp.bfloat16), w1_ref[...],
                preferred_element_type=jnp.float32)
    g_ref[...] = g.astype(g_ref.dtype)


def layer1_kernel(a_ref, g_ref, z_ref, *, num_classes):
    """z_tile = softmax(A_tile @ g) over the first `num_classes` lanes."""
    h1 = jnp.dot(a_ref[...], g_ref[...], preferred_element_type=jnp.float32)
    # Mask the lane-padding class columns before the row-wise softmax.
    col = lax.broadcasted_iota(jnp.int32, h1.shape, 1)
    h1m = jnp.where(col < num_classes, h1, jnp.float32(-1e30))
    m = jnp.max(h1m, axis=1, keepdims=True)
    e = jnp.exp(h1m - m)                       # padded cols -> exactly 0
    denom = jnp.sum(e, axis=1, keepdims=True)
    z_ref[...] = e * pl.reciprocal(denom, approx=True)


def gcn2_forward(a_hat, x, w0, w1):
    n, f = x.shape
    h = w0.shape[1]
    c = w1.shape[1]
    assert a_hat.shape == (n, n)
    assert w0.shape == (f, h)
    assert w1.shape == (h, c)

    hp = _round_up(h, 128)   # lane-dense hidden width
    cp = _round_up(c, 128)   # lane-dense class width
    tm = _row_tile(n)
    grid = (n // tm,)

    parallel = pltpu.CompilerParams(dimension_semantics=("parallel",))

    # bf16 MXU inputs; zero-padded weights make all padded outputs exactly zero.
    a_bf = a_hat.astype(jnp.bfloat16)
    x_bf = x.astype(jnp.bfloat16)
    w0p = jnp.zeros((f, hp), jnp.bfloat16).at[:, :h].set(w0.astype(jnp.bfloat16))
    w1p = jnp.zeros((hp, cp), jnp.bfloat16).at[:h, :c].set(w1.astype(jnp.bfloat16))

    # Stage 1: xw0 = X @ W0 (computed exactly once, row-tiled over X rows).
    xw0 = pl.pallas_call(
        xw0_kernel,
        out_shape=jax.ShapeDtypeStruct((n, hp), jnp.bfloat16),
        grid=grid,
        in_specs=[
            pl.BlockSpec((tm, f), lambda i: (i, 0)),    # X row tile
            pl.BlockSpec((f, hp), lambda i: (0, 0)),    # W0 padded (resident)
        ],
        out_specs=pl.BlockSpec((tm, hp), lambda i: (i, 0)),
        compiler_params=parallel,
    )(x_bf, w0p)

    # Stage 2 (first A pass): g = relu(A_hat @ xw0) @ W1, row-tiled over A_hat.
    g = pl.pallas_call(
        layer0_kernel,
        out_shape=jax.ShapeDtypeStruct((n, cp), jnp.bfloat16),
        grid=grid,
        in_specs=[
            pl.BlockSpec((tm, n), lambda i: (i, 0)),    # A row tile
            pl.BlockSpec((n, hp), lambda i: (0, 0)),    # xw0 (resident)
            pl.BlockSpec((hp, cp), lambda i: (0, 0)),   # W1 padded (resident)
        ],
        out_specs=pl.BlockSpec((tm, cp), lambda i: (i, 0)),
        compiler_params=parallel,
    )(a_bf, xw0, w1p)

    # Stage 3 (second A pass): Z = softmax(A_hat @ g), row-tiled over A_hat.
    z_pad = pl.pallas_call(
        functools.partial(layer1_kernel, num_classes=c),
        out_shape=jax.ShapeDtypeStruct((n, cp), jnp.float32),
        grid=grid,
        in_specs=[
            pl.BlockSpec((tm, n), lambda i: (i, 0)),    # A row tile
            pl.BlockSpec((n, cp), lambda i: (0, 0)),    # g (resident)
        ],
        out_specs=pl.BlockSpec((tm, cp), lambda i: (i, 0)),
        compiler_params=parallel,
    )(a_bf, g)

    return z_pad[:, :c]


def xavier_uniform(key, fan_in, fan_out):
    bound = jnp.sqrt(6.0 / (fan_in + fan_out))
    return jax.random.uniform(
        key, (fan_in, fan_out), dtype=jnp.float32, minval=-bound, maxval=bound
    )


def reference_forward(a_hat, x, w0, w1):
    h0 = jax.nn.relu(a_hat @ x @ w0)
    h1 = a_hat @ h0 @ w1
    return jax.nn.softmax(h1, axis=1)


if __name__ == "__main__":
    # Small, deterministic problem: N=64 nodes, input_dim=32, hidden=16, out_dim=8
    N, INPUT_DIM, HIDDEN, OUT_DIM = 64, 32, 16, 8

    key = jax.random.PRNGKey(0)
    k_a, k_x, k_w0, k_w1 = jax.random.split(key, 4)

    # Symmetric, row-normalized adjacency with self loops (A_hat).
    raw = jax.random.uniform(k_a, (N, N), dtype=jnp.float32)
    adj = (raw > 0.8).astype(jnp.float32)
    adj = jnp.maximum(adj, adj.T) + jnp.eye(N, dtype=jnp.float32)
    deg = jnp.sum(adj, axis=1, keepdims=True)
    a_hat = adj / deg

    x = jax.random.normal(k_x, (N, INPUT_DIM), dtype=jnp.float32)
    w0 = xavier_uniform(k_w0, INPUT_DIM, HIDDEN)
    w1 = xavier_uniform(k_w1, HIDDEN, OUT_DIM)

    z = gcn2_forward(a_hat, x, w0, w1)
    z = jax.block_until_ready(z)

    # Sanity check against plain-JAX f32 reference of forward_dense.
    # (Tolerance loosened for bf16 MXU inputs + reassociated matmuls.)
    z_ref = reference_forward(a_hat, x, w0, w1)
    assert z.shape == (N, OUT_DIM)
    assert jnp.allclose(z, z_ref, atol=2e-2, rtol=2e-2)
    assert jnp.allclose(jnp.sum(z, axis=1), 1.0, atol=5e-3)

    # TODO(synk): forward_sparse (torch sparse mm) and loss()/accuracy() helpers
    # are not part of the dense forward pass and are not implemented here.
    print("KERNEL_OK")
</pallas_src>

<mosaic_0001>
module attributes {stable_mosaic.version = 11 : i64} {
  func.func @xw0_kernel(%arg0: i32, %arg1: memref<64x32xbf16, #tpu.memory_space<vmem>>, %arg2: memref<32x128xbf16, #tpu.memory_space<vmem>>, %arg3: memref<64x128xbf16, #tpu.memory_space<vmem>>) attributes {dimension_semantics = [#tpu.dimension_semantics<parallel>], iteration_bounds = array<i64: 1>, scalar_prefetch = 0 : i64, scratch_operands = 0 : i64, tpu.core_type = #tpu.core_type<tc>, window_params = [{transform_indices = @transform_0, window_bounds = array<i64: 64, 32>}, {pipeline_mode = #tpu.pipeline_mode<synchronous>, transform_indices = @transform_1, window_bounds = array<i64: 32, 128>}, {transform_indices = @transform_2, window_bounds = array<i64: 64, 128>}]} {
    %c0 = arith.constant 0 : index
    %c0_0 = arith.constant 0 : index
    %0 = vector.load %arg1[%c0, %c0_0] : memref<64x32xbf16, #tpu.memory_space<vmem>>, vector<64x32xbf16>
    %c0_1 = arith.constant 0 : index
    %c0_2 = arith.constant 0 : index
    %1 = vector.load %arg2[%c0_1, %c0_2] : memref<32x128xbf16, #tpu.memory_space<vmem>>, vector<32x128xbf16>
    %cst = arith.constant dense<0.000000e+00> : vector<64x128xf32>
    %2 = tpu.matmul %0, %1, %cst {dimension_numbers = #tpu.dot_dimension_numbers<[1], [0], [0], [1], [0, 0, 1, 1], [], []>} : vector<64x32xbf16>, vector<32x128xbf16>, vector<64x128xf32> -> vector<64x128xf32>
    %3 = arith.truncf %2 : vector<64x128xf32> to vector<64x128xbf16>
    %c0_3 = arith.constant 0 : index
    %c0_4 = arith.constant 0 : index
    %4 = vector.load %arg3[%c0_3, %c0_4] : memref<64x128xbf16, #tpu.memory_space<vmem>>, vector<64x128xbf16>
    tpu.vector_store %arg3[%c0_3, %c0_4], %3 {strides = array<i32>} : memref<64x128xbf16, #tpu.memory_space<vmem>>, vector<64x128xbf16>,
    return
  }
  func.func @transform_0(%arg0: i32) -> (i32, i32) {
    %c0_i32 = arith.constant 0 : i32
    %c0_i32_0 = arith.constant 0 : i32
    return %arg0, %c0_i32 : i32, i32
  }
  func.func @transform_1(%arg0: i32) -> (i32, i32) {
    %c0_i32 = arith.constant 0 : i32
    %c0_i32_0 = arith.constant 0 : i32
    %c0_i32_1 = arith.constant 0 : i32
    return %c0_i32, %c0_i32_0 : i32, i32
  }
  func.func @transform_2(%arg0: i32) -> (i32, i32) {
    %c0_i32 = arith.constant 0 : i32
    %c0_i32_0 = arith.constant 0 : i32
    return %arg0, %c0_i32 : i32, i32
  }
}

</mosaic_0001>

<bundles_post_ra>
// kernel: tpu_custom_call.1
= control target key start
LH: loop header
LB: loop body
LE: loop exit
PB: predicated region body
PF: predicated region fallthrough
CT: control target
= control target key end

     0   :  { %vm57_vm0 = vcmask 261120   ;;  %s343_s0 = inlined_call_operand.vmem [shape: bf16[64,32], index: 0, kind: input, shape index: {}]   ;;  %s344_s1 = inlined_call_operand.vmem [shape: bf16[32,128], index: 1, kind: input, shape index: {}]   ;;  %s345_s2 = inlined_call_operand.hbm [shape: bf16[64,128], index: 2, kind: output, shape index: {}]  }
   0x1   :  { %v265_v0 = vld [vmem:[%s344_s1] sm:$0xff]   ;;  %v266_v1 = vld [vmem:[%s344_s1 + $0x8] sm:$0xff]   ;;  %v268_v3 = vld [vmem:[%s343_s0 + $0x10] sm:$0xff]  }
   0x2   :  { %246 = vmatprep.subr.bf16.mxu0 %v265_v0  ;;  %258 = vmatprep.subr.bf16.mxu1 %v265_v0  ;;  %v267_v2 = vld [vmem:[%s343_s0] sm:$0xff]   ;;  %v269_v4 = vld [vmem:[%s343_s0 + $0x8] sm:$0xff]   ;;  %v270_v5 = vld [vmem:[%s343_s0 + $0x18] sm:$0xff]  }
   0x3   :  { %247 = vmatpush3.bf16.msra.mxu0 %v265_v0  ;;  %260 = vmatpush3.bf16.msra.mxu1 %v265_v0 }
   0x4   :  { %248 = vmatprep.subr.bf16.mxu0 %v266_v1  ;;  %259 = vmatprep.subr.bf16.mxu1 %v266_v1 }
   0x5   :  { %250 = vmatprep.mubr.msk.bf16.mxu0 %vm57_vm0, %v267_v2  ;;  %254 = vmatprep.mubr.msk.bf16.mxu1 %vm57_vm0, %v268_v3 }
   0x6   :  { %7 = vsyncpa [#allocation3], 0  ;;  %s295_s20 = smov [#allocation2]  }
   0x7   :  { %249 = vmatpush3.bf16.msra.mxu0 %v266_v1  ;;  %261 = vmatpush3.bf16.msra.mxu1 %v266_v1  ;;  %s180_s21 = sshll.u32 %s295_s20, 4  ;;  %s181_s21 = int_to_ptr.vmem [resolvable:$true] %s180_s21 }
   0x8   :  { %s271_s0 = scalar_lea.vmem %s181_s21, 512  ;;  %p276_p1 = scmp.lt.s32.totalorder %s181_s21, %s181_s21 }
   0x9   :  { %p272_p0 = scmp.ne.s32.totalorder %s181_s21, %s271_s0  ;;  %p277_p2 = scmp.lt.s32.totalorder %s271_s0, %s271_s0 }
   0xa   :  { %251 = vmatmul.mubr.msk.bf16.vlgmr.msra.gmra.mrb[0].mxu0 %vm57_vm0, %v269_v4  ;;  %255 = vmatmul.mubr.msk.bf16.vlgmr.msra.gmra.mrb[0].mxu1 %vm57_vm0, %v270_v5 }
   0xb   :  { %p278_p3 = por %p277_p2, %p276_p1 }
   0xd   :  { %p279_p4 = pnand %p278_p3, %p272_p0 }
  0xdd   :  { %v252_v6 = vpop.f32.mrb[0].mxu0  ;;  %v256_v7 = vpop.f32.mrb[0].mxu1 }
  0xde   :  { %v104_v8 = vpop.f32.mrb[1].mxu0  ;;  %v120_v9 = vpop.f32.mrb[1].mxu1 }
  0xdf   :  { %v253_v10 = vpop.f32.mrb[2].mxu0  ;;  %v257_v11 = vpop.f32.mrb[2].mxu1 }
  0xe0   :  { %v225_v12 = vpack.c.bf16 %v253_v10, %v252_v6  ;;  %v235_v13 = vpack.c.bf16 %v257_v11, %v256_v7  ;;  %v107_v14 = vpop.f32.mrb[3].mxu0  ;;  %v123_v15 = vpop.f32.mrb[3].mxu1 }
  0xe1   :  { %v220_v16 = vpack.c.bf16 %v107_v14, %v104_v8  ;;  %v230_v17 = vpack.c.bf16 %v123_v15, %v120_v9 }
  0xe2   :  { %237 = vst [vmem:[#allocation2 + $0x8] sm:$0xff] %v225_v12   ;;  %239 = vst [vmem:[#allocation2 + $0x18] sm:$0xff] %v235_v13  }
  0xe3   :  { %221 = vst [vmem:[#allocation2] sm:$0xff] %v220_v16   ;;  %238 = vst [vmem:[#allocation2 + $0x10] sm:$0xff] %v230_v17  }
  0xe4   :  { %282 = shalt.err (!%p279_p4)
}
  0xe5   :  { %s283_s24 = scalar_lea.hbm %s345_s2, 512 }
  0xe6   :  { %p284_p5 = scmp.ne.s32.totalorder %s345_s2, %s283_s24  ;;  %p287_p6 = scmp.lt.u32.totalorder %s283_s24, %s345_s2 }
  0xe8   :  { %p289_p7 = pnand %p287_p6, %p284_p5 }
  0xea   :  { %292 = shalt.err (!%p289_p7)
}
  0xeb   :  { %s296_s29 = smov 64   ;;  %s297_s30 = smov 4  }
  0xec   :  { %186 = dma.vmem_to_hbm [thread:$0]  %s181_s21, 512, %s345_s2, [#allocation3], %s296_s29, %s296_s29, %s297_s30  }
  0xed   :  { %293 = dma.done.wait [#allocation3], 512  }
  0xee   :  { %294 = vsyncadd [#allocation3], 4294966784 }
  0xef   :  { %190 = vsyncpa [#allocation3], 1 }

</bundles_post_ra>
